<compile_context>
chip_gen: v7x
topology: tpu7x:2x2x1
jax: 0.10.0
libtpu: 0.0.40
codegen_flags: <defaults>
</compile_context>

<pallas_src>
import jax
import jax.numpy as jnp
from jax.experimental import pallas as pl
from jax.experimental.pallas import tpu as pltpu

TARGET_COVERAGE = 0.9
LAMBDA_WIDTH = 0.1

_LANE = 128
# Below this many elements, fused XLA beats the fixed pallas_call overhead.
_PALLAS_MIN_ELEMENTS = 4096


def coverage_loss_ref(lower, upper, gt,
                      target_coverage=TARGET_COVERAGE,
                      lambda_width=LAMBDA_WIDTH):
    """Pure-JAX reference mirroring the PyTorch forward."""
    covered = jnp.logical_and(gt >= lower, gt <= upper)
    actual_coverage = jnp.mean(covered.astype(jnp.float32))
    coverage_term = (actual_coverage - target_coverage) ** 2
    avg_width = jnp.mean((upper - lower).astype(jnp.float32))
    coord_mag = jnp.mean(jnp.abs(gt).astype(jnp.float32))
    normalized_width = avg_width / (coord_mag + 1e-6)
    return coverage_term + lambda_width * normalized_width


def _coverage_loss_kernel(nrows_ref, lower_ref, upper_ref, gt_ref, out_ref,
                          count_acc, width_acc, mag_acc):
    step = pl.program_id(0)
    last = pl.num_programs(0) - 1
    tr = lower_ref.shape[0]

    @pl.when(step == 0)
    def _init():
        count_acc[...] = jnp.zeros_like(count_acc)
        width_acc[...] = jnp.zeros_like(width_acc)
        mag_acc[...] = jnp.zeros_like(mag_acc)

    # Cast in-kernel (VPU work hidden under DMA); HBM stays native dtype.
    lower = lower_ref[...].astype(jnp.float32)
    upper = upper_ref[...].astype(jnp.float32)
    gt = gt_ref[...].astype(jnp.float32)

    def fold(x):
        # (tr, 128) -> accumulator shape using sublane-group adds (pure VALU;
        # the reshape stays on (8,128) tile boundaries so it is a free view).
        if tr % 8 == 0:
            return x.reshape(tr // 8, 8, 128).sum(axis=0)
        # Degenerate single-tile case (tr == full row count, not 8-aligned):
        # one sublane reduce; it only ever runs for a single grid step.
        return jnp.sum(x, axis=0, keepdims=True)

    def accumulate(lo, up, g):
        covered = jnp.logical_and(g >= lo, g <= up).astype(jnp.float32)
        count_acc[...] += fold(covered)
        width_acc[...] += fold(up - lo)
        mag_acc[...] += fold(jnp.abs(g))

    # Steady state: full tiles, no masking work at all.
    @pl.when(step < last)
    def _body():
        accumulate(lower, upper, gt)

    # Last tile only: neutralize rows past the end of the slab (Pallas block
    # padding holds unspecified data), then do the single XLU reduce + write.
    @pl.when(step == last)
    def _epilogue():
        valid_rows = nrows_ref[0] - step * tr
        row_id = jax.lax.broadcasted_iota(jnp.int32, (tr, _LANE), 0)
        keep = row_id < valid_rows
        # Neutral values: lower=upper=1 -> width 0 and gt=0 is NOT covered;
        # gt=0 -> |gt| contributes 0.  So masked rows add exactly zero.
        accumulate(jnp.where(keep, lower, 1.0),
                   jnp.where(keep, upper, 1.0),
                   jnp.where(keep, gt, 0.0))
        out_ref[0] = jnp.sum(count_acc[...])
        out_ref[1] = jnp.sum(width_acc[...])
        out_ref[2] = jnp.sum(mag_acc[...])


def _round_up(x, m):
    return (x + m - 1) // m * m


def _sublane_pack(dtype):
    # Rows per packed sublane group: 8 (4-byte), 16 (2-byte), 32 (1-byte).
    return {4: 8, 2: 16, 1: 32}.get(jnp.dtype(dtype).itemsize, 8)


def coverage_loss(pred_intervals_lower, pred_intervals_upper, gt_coords, *,
                  target_coverage=TARGET_COVERAGE,
                  lambda_width=LAMBDA_WIDTH,
                  tile_rows=2048,          # 6 MiB double-buffered; v5e-safe.
                  force_pallas=False):
    """Scalar CoverageLoss from [B, 4] lower/upper bounds and ground truth."""
    B, C = pred_intervals_lower.shape
    assert pred_intervals_upper.shape == (B, C)
    assert gt_coords.shape == (B, C)
    n_valid = B * C

    # Tiny inputs: fused XLA beats the pallas_call launch + DMA setup.
    if not force_pallas and n_valid < _PALLAS_MIN_ELEMENTS:
        return coverage_loss_ref(pred_intervals_lower, pred_intervals_upper,
                                 gt_coords, target_coverage, lambda_width)

    rows = pl.cdiv(n_valid, _LANE)
    sub = max(_sublane_pack(pred_intervals_lower.dtype),
              _sublane_pack(pred_intervals_upper.dtype),
              _sublane_pack(gt_coords.dtype))

    # Tile rows: sublane-pack aligned.  If the whole slab fits in one tile,
    # use the exact row count (block == full array dim is always legal), so
    # the single-tile case has no block padding at all.
    tr = _round_up(min(tile_rows, rows), sub)
    if tr >= rows:
        tr = rows
    num_tiles = pl.cdiv(rows, tr)
    acc_rows = 8 if tr % 8 == 0 else 1
    # Per-lane-slot covered counts must stay exact in f32 accumulation.
    assert pl.cdiv(rows, acc_rows) < (1 << 24), "count accumulator overflow"

    def to_slab(x, pad_value):
        # Free reshape (bitcast) when B*C is a multiple of 128; otherwise one
        # pad copy up to the next full 128-lane row (never up to tile
        # multiples).  Padding uses the same neutral values as the in-kernel
        # mask, so padded lanes contribute exactly zero to every sum.
        flat = x.reshape(-1)
        slab_elems = rows * _LANE
        if slab_elems != n_valid:
            flat = jnp.pad(flat, (0, slab_elems - n_valid),
                           constant_values=pad_value)
        return flat.reshape(rows, _LANE)

    lower2d = to_slab(pred_intervals_lower, 1)
    upper2d = to_slab(pred_intervals_upper, 1)
    gt2d = to_slab(gt_coords, 0)

    bytes_per_elem = (lower2d.dtype.itemsize + upper2d.dtype.itemsize
                      + gt2d.dtype.itemsize)
    cost = pl.CostEstimate(
        flops=8 * rows * _LANE,
        transcendentals=0,
        bytes_accessed=rows * _LANE * bytes_per_elem + 3 * 4)

    tile_spec = pl.BlockSpec((tr, _LANE), lambda i, nrows: (i, 0))
    partials = pl.pallas_call(
        _coverage_loss_kernel,
        out_shape=jax.ShapeDtypeStruct((3,), jnp.float32),
        grid_spec=pltpu.PrefetchScalarGridSpec(
            num_scalar_prefetch=1,
            grid=(num_tiles,),
            in_specs=[tile_spec, tile_spec, tile_spec],
            out_specs=pl.BlockSpec(memory_space=pltpu.MemorySpace.SMEM),
            scratch_shapes=[pltpu.VMEM((acc_rows, _LANE), jnp.float32),
                            pltpu.VMEM((acc_rows, _LANE), jnp.float32),
                            pltpu.VMEM((acc_rows, _LANE), jnp.float32)]),
        compiler_params=pltpu.CompilerParams(
            dimension_semantics=("arbitrary",)),
        cost_estimate=cost,
    )(jnp.array([rows], dtype=jnp.int32), lower2d, upper2d, gt2d)

    # Trivially-fused scalar epilogue: exact divides (matches .mean()).
    n = jnp.float32(n_valid)
    actual_coverage = partials[0] / n
    coverage_term = (actual_coverage - target_coverage) ** 2
    avg_width = partials[1] / n
    coord_mag = partials[2] / n
    return coverage_term + lambda_width * (avg_width / (coord_mag + 1e-6))


if __name__ == "__main__":
    key = jax.random.PRNGKey(0)

    def make_inputs(batch, k):
        k1, k2, k3 = jax.random.split(k, 3)
        gt = jax.random.normal(k1, (batch, 4), dtype=jnp.float32) * 10.0
        center = gt + jax.random.normal(k2, (batch, 4), dtype=jnp.float32)
        half = jnp.abs(jax.random.normal(k3, (batch, 4), dtype=jnp.float32)) * 2.0
        return center - half, center + half, gt

    k1, k2, k3 = jax.random.split(key, 3)

    # Small [batch, 4] case exactly as the module uses (forces kernel path).
    lo, up, gt = make_inputs(8, k1)
    got = jax.block_until_ready(coverage_loss(lo, up, gt, force_pallas=True))
    want = coverage_loss_ref(lo, up, gt)
    assert jnp.allclose(got, want, rtol=1e-4, atol=1e-5), (got, want)

    # Lane-aligned (zero-copy) path, multi-tile grid, full last tile.
    lo, up, gt = make_inputs(4096, k2)
    got = jax.block_until_ready(
        coverage_loss(lo, up, gt, tile_rows=16, force_pallas=True))
    want = coverage_loss_ref(lo, up, gt)
    assert jnp.allclose(got, want, rtol=1e-4, atol=1e-5), (got, want)

    # Misaligned lane tail + partial last tile (exercises the in-kernel mask).
    lo, up, gt = make_inputs(5000, k3)
    got = jax.block_until_ready(
        coverage_loss(lo, up, gt, tile_rows=16, force_pallas=True))
    want = coverage_loss_ref(lo, up, gt)
    assert jnp.allclose(got, want, rtol=1e-4, atol=1e-5), (got, want)

    print("KERNEL_OK")
</pallas_src>

<mosaic_0001>
module attributes {stable_mosaic.version = 11 : i64} {
  func.func @_coverage_loss_kernel(%arg0: i32, %arg1: memref<1xi32, #tpu.memory_space<smem>>, %arg2: memref<1x128xf32, #tpu.memory_space<vmem>>, %arg3: memref<1x128xf32, #tpu.memory_space<vmem>>, %arg4: memref<1x128xf32, #tpu.memory_space<vmem>>, %arg5: memref<3xf32, #tpu.memory_space<smem>>, %arg6: memref<1x128xf32, #tpu.memory_space<vmem>>, %arg7: memref<1x128xf32, #tpu.memory_space<vmem>>, %arg8: memref<1x128xf32, #tpu.memory_space<vmem>>) attributes {dimension_semantics = [#tpu.dimension_semantics<arbitrary>], iteration_bounds = array<i64: 1>, scalar_prefetch = 1 : i64, scratch_operands = 3 : i64, tpu.core_type = #tpu.core_type<tc>, window_params = [{transform_indices = @transform_0, window_bounds = array<i64: 1, 128>}, {transform_indices = @transform_1, window_bounds = array<i64: 1, 128>}, {transform_indices = @transform_2, window_bounds = array<i64: 1, 128>}, {transform_indices = @transform_3, window_bounds = array<i64: 3>}]} {
    %c0_i32 = arith.constant 0 : i32
    %0 = arith.cmpi eq, %arg0, %c0_i32 : i32
    %1 = arith.extui %0 : i1 to i32
    %c0_i32_0 = arith.constant 0 : i32
    %2 = arith.cmpi ne, %1, %c0_i32_0 : i32
    scf.if %2 {
      %cst = arith.constant 0.000000e+00 : f32
      %12 = vector.broadcast %cst : f32 to vector<1x128xf32>
      %c0_10 = arith.constant 0 : index
      %c0_11 = arith.constant 0 : index
      %13 = vector.load %arg6[%c0_10, %c0_11] : memref<1x128xf32, #tpu.memory_space<vmem>>, vector<1x128xf32>
      tpu.vector_store %arg6[%c0_10, %c0_11], %12 {strides = array<i32>} : memref<1x128xf32, #tpu.memory_space<vmem>>, vector<1x128xf32>,
      %cst_12 = arith.constant 0.000000e+00 : f32
      %14 = vector.broadcast %cst_12 : f32 to vector<1x128xf32>
      %c0_13 = arith.constant 0 : index
      %c0_14 = arith.constant 0 : index
      %15 = vector.load %arg7[%c0_13, %c0_14] : memref<1x128xf32, #tpu.memory_space<vmem>>, vector<1x128xf32>
      tpu.vector_store %arg7[%c0_13, %c0_14], %14 {strides = array<i32>} : memref<1x128xf32, #tpu.memory_space<vmem>>, vector<1x128xf32>,
      %cst_15 = arith.constant 0.000000e+00 : f32
      %16 = vector.broadcast %cst_15 : f32 to vector<1x128xf32>
      %c0_16 = arith.constant 0 : index
      %c0_17 = arith.constant 0 : index
      %17 = vector.load %arg8[%c0_16, %c0_17] : memref<1x128xf32, #tpu.memory_space<vmem>>, vector<1x128xf32>
      tpu.vector_store %arg8[%c0_16, %c0_17], %16 {strides = array<i32>} : memref<1x128xf32, #tpu.memory_space<vmem>>, vector<1x128xf32>,
    } else {
    }
    %c0 = arith.constant 0 : index
    %c0_1 = arith.constant 0 : index
    %3 = vector.load %arg2[%c0, %c0_1] : memref<1x128xf32, #tpu.memory_space<vmem>>, vector<1x128xf32>
    %c0_2 = arith.constant 0 : index
    %c0_3 = arith.constant 0 : index
    %4 = vector.load %arg3[%c0_2, %c0_3] : memref<1x128xf32, #tpu.memory_space<vmem>>, vector<1x128xf32>
    %c0_4 = arith.constant 0 : index
    %c0_5 = arith.constant 0 : index
    %5 = vector.load %arg4[%c0_4, %c0_5] : memref<1x128xf32, #tpu.memory_space<vmem>>, vector<1x128xf32>
    %c0_i32_6 = arith.constant 0 : i32
    %6 = arith.cmpi slt, %arg0, %c0_i32_6 : i32
    %7 = arith.extui %6 : i1 to i32
    %c0_i32_7 = arith.constant 0 : i32
    %8 = arith.cmpi ne, %7, %c0_i32_7 : i32
    scf.if %8 {
      %12 = arith.cmpf oge, %5, %3 : vector<1x128xf32>
      %13 = arith.cmpf ole, %5, %4 : vector<1x128xf32>
      %14 = arith.andi %12, %13 : vector<1x128xi1>
      %15 = arith.extui %14 : vector<1x128xi1> to vector<1x128xi32>
      %16 = arith.sitofp %15 : vector<1x128xi32> to vector<1x128xf32>
      %c0_10 = arith.constant 0 : index
      %c0_11 = arith.constant 0 : index
      %17 = vector.load %arg6[%c0_10, %c0_11] : memref<1x128xf32, #tpu.memory_space<vmem>>, vector<1x128xf32>
      %cst = arith.constant dense<0.000000e+00> : vector<128xf32>
      %18 = vector.multi_reduction <add>, %16, %cst [0] : vector<1x128xf32> to vector<128xf32>
      %19 = vector.shape_cast %18 : vector<128xf32> to vector<1x128xf32>
      %20 = arith.addf %17, %19 : vector<1x128xf32>
      %c0_12 = arith.constant 0 : index
      %c0_13 = arith.constant 0 : index
      %21 = vector.load %arg6[%c0_12, %c0_13] : memref<1x128xf32, #tpu.memory_space<vmem>>, vector<1x128xf32>
      tpu.vector_store %arg6[%c0_12, %c0_13], %20 {strides = array<i32>} : memref<1x128xf32, #tpu.memory_space<vmem>>, vector<1x128xf32>,
      %c0_14 = arith.constant 0 : index
      %c0_15 = arith.constant 0 : index
      %22 = vector.load %arg7[%c0_14, %c0_15] : memref<1x128xf32, #tpu.memory_space<vmem>>, vector<1x128xf32>
      %23 = arith.subf %4, %3 : vector<1x128xf32>
      %cst_16 = arith.constant dense<0.000000e+00> : vector<128xf32>
      %24 = vector.multi_reduction <add>, %23, %cst_16 [0] : vector<1x128xf32> to vector<128xf32>
      %25 = vector.shape_cast %24 : vector<128xf32> to vector<1x128xf32>
      %26 = arith.addf %22, %25 : vector<1x128xf32>
      %c0_17 = arith.constant 0 : index
      %c0_18 = arith.constant 0 : index
      %27 = vector.load %arg7[%c0_17, %c0_18] : memref<1x128xf32, #tpu.memory_space<vmem>>, vector<1x128xf32>
      tpu.vector_store %arg7[%c0_17, %c0_18], %26 {strides = array<i32>} : memref<1x128xf32, #tpu.memory_space<vmem>>, vector<1x128xf32>,
      %c0_19 = arith.constant 0 : index
      %c0_20 = arith.constant 0 : index
      %28 = vector.load %arg8[%c0_19, %c0_20] : memref<1x128xf32, #tpu.memory_space<vmem>>, vector<1x128xf32>
      %29 = math.absf %5 : vector<1x128xf32>
      %cst_21 = arith.constant dense<0.000000e+00> : vector<128xf32>
      %30 = vector.multi_reduction <add>, %29, %cst_21 [0] : vector<1x128xf32> to vector<128xf32>
      %31 = vector.shape_cast %30 : vector<128xf32> to vector<1x128xf32>
      %32 = arith.addf %28, %31 : vector<1x128xf32>
      %c0_22 = arith.constant 0 : index
      %c0_23 = arith.constant 0 : index
      %33 = vector.load %arg8[%c0_22, %c0_23] : memref<1x128xf32, #tpu.memory_space<vmem>>, vector<1x128xf32>
      tpu.vector_store %arg8[%c0_22, %c0_23], %32 {strides = array<i32>} : memref<1x128xf32, #tpu.memory_space<vmem>>, vector<1x128xf32>,
    } else {
    }
    %c0_i32_8 = arith.constant 0 : i32
    %9 = arith.cmpi eq, %arg0, %c0_i32_8 : i32
    %10 = arith.extui %9 : i1 to i32
    %c0_i32_9 = arith.constant 0 : i32
    %11 = arith.cmpi ne, %10, %c0_i32_9 : i32
    scf.if %11 {
      %c0_10 = arith.constant 0 : index
      %12 = memref.load %arg1[%c0_10] : memref<1xi32, #tpu.memory_space<smem>>
      %c1_i32 = arith.constant 1 : i32
      %13 = arith.muli %arg0, %c1_i32 : i32
      %14 = arith.subi %12, %13 : i32
      %15 = tpu.iota {dimensions = array<i32: 0>} : vector<1x128xi32>
      %16 = vector.broadcast %14 : i32 to vector<1x128xi32>
      %17 = arith.cmpi slt, %15, %16 : vector<1x128xi32>
      %cst = arith.constant 1.000000e+00 : f32
      %18 = vector.broadcast %cst : f32 to vector<1x128xf32>
      %19 = arith.select %17, %3, %18 : vector<1x128xi1>, vector<1x128xf32>
      %cst_11 = arith.constant 1.000000e+00 : f32
      %20 = vector.broadcast %cst_11 : f32 to vector<1x128xf32>
      %21 = arith.select %17, %4, %20 : vector<1x128xi1>, vector<1x128xf32>
      %cst_12 = arith.constant 0.000000e+00 : f32
      %22 = vector.broadcast %cst_12 : f32 to vector<1x128xf32>
      %23 = arith.select %17, %5, %22 : vector<1x128xi1>, vector<1x128xf32>
      %24 = arith.cmpf oge, %23, %19 : vector<1x128xf32>
      %25 = arith.cmpf ole, %23, %21 : vector<1x128xf32>
      %26 = arith.andi %24, %25 : vector<1x128xi1>
      %27 = arith.extui %26 : vector<1x128xi1> to vector<1x128xi32>
      %28 = arith.sitofp %27 : vector<1x128xi32> to vector<1x128xf32>
      %c0_13 = arith.constant 0 : index
      %c0_14 = arith.constant 0 : index
      %29 = vector.load %arg6[%c0_13, %c0_14] : memref<1x128xf32, #tpu.memory_space<vmem>>, vector<1x128xf32>
      %cst_15 = arith.constant dense<0.000000e+00> : vector<128xf32>
      %30 = vector.multi_reduction <add>, %28, %cst_15 [0] : vector<1x128xf32> to vector<128xf32>
      %31 = vector.shape_cast %30 : vector<128xf32> to vector<1x128xf32>
      %32 = arith.addf %29, %31 : vector<1x128xf32>
      %c0_16 = arith.constant 0 : index
      %c0_17 = arith.constant 0 : index
      %33 = vector.load %arg6[%c0_16, %c0_17] : memref<1x128xf32, #tpu.memory_space<vmem>>, vector<1x128xf32>
      tpu.vector_store %arg6[%c0_16, %c0_17], %32 {strides = array<i32>} : memref<1x128xf32, #tpu.memory_space<vmem>>, vector<1x128xf32>,
      %c0_18 = arith.constant 0 : index
      %c0_19 = arith.constant 0 : index
      %34 = vector.load %arg7[%c0_18, %c0_19] : memref<1x128xf32, #tpu.memory_space<vmem>>, vector<1x128xf32>
      %35 = arith.subf %21, %19 : vector<1x128xf32>
      %cst_20 = arith.constant dense<0.000000e+00> : vector<128xf32>
      %36 = vector.multi_reduction <add>, %35, %cst_20 [0] : vector<1x128xf32> to vector<128xf32>
      %37 = vector.shape_cast %36 : vector<128xf32> to vector<1x128xf32>
      %38 = arith.addf %34, %37 : vector<1x128xf32>
      %c0_21 = arith.constant 0 : index
      %c0_22 = arith.constant 0 : index
      %39 = vector.load %arg7[%c0_21, %c0_22] : memref<1x128xf32, #tpu.memory_space<vmem>>, vector<1x128xf32>
      tpu.vector_store %arg7[%c0_21, %c0_22], %38 {strides = array<i32>} : memref<1x128xf32, #tpu.memory_space<vmem>>, vector<1x128xf32>,
      %c0_23 = arith.constant 0 : index
      %c0_24 = arith.constant 0 : index
      %40 = vector.load %arg8[%c0_23, %c0_24] : memref<1x128xf32, #tpu.memory_space<vmem>>, vector<1x128xf32>
      %41 = math.absf %23 : vector<1x128xf32>
      %cst_25 = arith.constant dense<0.000000e+00> : vector<128xf32>
      %42 = vector.multi_reduction <add>, %41, %cst_25 [0] : vector<1x128xf32> to vector<128xf32>
      %43 = vector.shape_cast %42 : vector<128xf32> to vector<1x128xf32>
      %44 = arith.addf %40, %43 : vector<1x128xf32>
      %c0_26 = arith.constant 0 : index
      %c0_27 = arith.constant 0 : index
      %45 = vector.load %arg8[%c0_26, %c0_27] : memref<1x128xf32, #tpu.memory_space<vmem>>, vector<1x128xf32>
      tpu.vector_store %arg8[%c0_26, %c0_27], %44 {strides = array<i32>} : memref<1x128xf32, #tpu.memory_space<vmem>>, vector<1x128xf32>,
      %c0_28 = arith.constant 0 : index
      %c0_29 = arith.constant 0 : index
      %46 = vector.load %arg6[%c0_28, %c0_29] : memref<1x128xf32, #tpu.memory_space<vmem>>, vector<1x128xf32>
      %47 = vector.shape_cast %46 : vector<1x128xf32> to vector<1x1x128xf32>
      %cst_30 = arith.constant dense<0.000000e+00> : vector<1xf32>
      %48 = vector.multi_reduction <add>, %47, %cst_30 [1, 2] : vector<1x1x128xf32> to vector<1xf32>
      %49 = vector.shape_cast %48 : vector<1xf32> to vector<1x1x1xf32>
      %50 = vector.extract %49[0, 0, 0] : f32 from vector<1x1x1xf32>
      %c0_31 = arith.constant 0 : index
      %51 = memref.load %arg5[%c0_31] : memref<3xf32, #tpu.memory_space<smem>>
      memref.store %50, %arg5[%c0_31] : memref<3xf32, #tpu.memory_space<smem>>
      %c0_32 = arith.constant 0 : index
      %c0_33 = arith.constant 0 : index
      %52 = vector.load %arg7[%c0_32, %c0_33] : memref<1x128xf32, #tpu.memory_space<vmem>>, vector<1x128xf32>
      %53 = vector.shape_cast %52 : vector<1x128xf32> to vector<1x1x128xf32>
      %cst_34 = arith.constant dense<0.000000e+00> : vector<1xf32>
      %54 = vector.multi_reduction <add>, %53, %cst_34 [1, 2] : vector<1x1x128xf32> to vector<1xf32>
      %55 = vector.shape_cast %54 : vector<1xf32> to vector<1x1x1xf32>
      %56 = vector.extract %55[0, 0, 0] : f32 from vector<1x1x1xf32>
      %c1 = arith.constant 1 : index
      %57 = memref.load %arg5[%c1] : memref<3xf32, #tpu.memory_space<smem>>
      memref.store %56, %arg5[%c1] : memref<3xf32, #tpu.memory_space<smem>>
      %c0_35 = arith.constant 0 : index
      %c0_36 = arith.constant 0 : index
      %58 = vector.load %arg8[%c0_35, %c0_36] : memref<1x128xf32, #tpu.memory_space<vmem>>, vector<1x128xf32>
      %59 = vector.shape_cast %58 : vector<1x128xf32> to vector<1x1x128xf32>
      %cst_37 = arith.constant dense<0.000000e+00> : vector<1xf32>
      %60 = vector.multi_reduction <add>, %59, %cst_37 [1, 2] : vector<1x1x128xf32> to vector<1xf32>
      %61 = vector.shape_cast %60 : vector<1xf32> to vector<1x1x1xf32>
      %62 = vector.extract %61[0, 0, 0] : f32 from vector<1x1x1xf32>
      %c2 = arith.constant 2 : index
      %63 = memref.load %arg5[%c2] : memref<3xf32, #tpu.memory_space<smem>>
      memref.store %62, %arg5[%c2] : memref<3xf32, #tpu.memory_space<smem>>
    } else {
    }
    return
  }
  func.func @transform_0(%arg0: i32, %arg1: memref<1xi32, #tpu.memory_space<smem>>) -> (i32, i32) {
    %c0_i32 = arith.constant 0 : i32
    %c0_i32_0 = arith.constant 0 : i32
    return %arg0, %c0_i32 : i32, i32
  }
  func.func @transform_1(%arg0: i32, %arg1: memref<1xi32, #tpu.memory_space<smem>>) -> (i32, i32) {
    %c0_i32 = arith.constant 0 : i32
    %c0_i32_0 = arith.constant 0 : i32
    return %arg0, %c0_i32 : i32, i32
  }
  func.func @transform_2(%arg0: i32, %arg1: memref<1xi32, #tpu.memory_space<smem>>) -> (i32, i32) {
    %c0_i32 = arith.constant 0 : i32
    %c0_i32_0 = arith.constant 0 : i32
    return %arg0, %c0_i32 : i32, i32
  }
  func.func @transform_3(%arg0: i32, %arg1: memref<1xi32, #tpu.memory_space<smem>>) -> i32 {
    %c0_i32 = arith.constant 0 : i32
    %c0_i32_0 = arith.constant 0 : i32
    return %c0_i32 : i32
  }
}

</mosaic_0001>

<bundles_post_ra>
// kernel: tpu_custom_call.1
= control target key start
LH: loop header
LB: loop body
LE: loop exit
PB: predicated region body
PF: predicated region fallthrough
CT: control target
= control target key end

     0   :  { %v55_v0 = vlaneseq  ;;  %v156_v1 = vmov 0.0   ;;  %s207_s0 = inlined_call_operand.<no memory space> [shape: s32[1], index: 0, kind: input, shape index: {}]   ;;  %s208_s1 = inlined_call_operand.vmem [shape: f32[1,128], index: 1, kind: input, shape index: {}]   ;;  %s209_s2 = inlined_call_operand.vmem [shape: f32[1,128], index: 2, kind: input, shape index: {}]   ;;  %s210_s3 = inlined_call_operand.vmem [shape: f32[1,128], index: 3, kind: input, shape index: {}]   ;;  %s211_s4 = inlined_call_operand.hbm [shape: f32[3], index: 4, kind: output, shape index: {}]  }
   0x1   :  { %23 = vst [vmem:[#allocation4] sm:$0x1] %v156_v1  ;;  %v26_v2 = vld [vmem:[%s210_s3] sm:$0x1]  ;;  %v57_v3 = vstv %s207_s0  ;;  %21 = vst [vmem:[#allocation2] sm:$0x1] %v156_v1 }
   0x2   :  { %22 = vst [vmem:[#allocation3] sm:$0x1] %v156_v1 }
   0x3   :  { %10 = vsyncpa [#allocation8], 0  ;;  %v56_v4 = vshrl.u32 %v55_v0, 7  ;;  %v24_v5 = vld [vmem:[%s208_s1] sm:$0x1]  ;;  %vm82_vm4 = vcmask 1040384  }
   0x4   :  { %v25_v6 = vld [vmem:[%s209_s2] sm:$0x1]  ;;  %s144_s24 = scalar_lea.hbm %s211_s4, 16 }
   0x5   :  { %vm58_vm0 = vcmp.lt.s32.totalorder %v56_v4, %v57_v3  ;;  %p145_p0 = scmp.ne.s32.totalorder %s211_s4, %s144_s24  ;;  %p148_p1 = scmp.lt.u32.totalorder %s144_s24, %s211_s4 }
   0x6   :  { %v61_v7 = vsel %vm58_vm0, %v26_v2, 0.0  ;;  %v59_v8 = vsel %vm58_vm0, %v24_v5, 1.0  ;;  %v60_v9 = vsel %vm58_vm0, %v25_v6, 1.0 }
   0x7   :  { %v77_v10 = vand.u32 2147483647, %v61_v7  ;;  %vm62_vm1 = vcmp.ge.f32.partialorder %v61_v7, %v59_v8  ;;  %vm63_vm2 = vcmp.le.f32.partialorder %v61_v7, %v60_v9  ;;  %v72_v11 = vsub.f32 %v60_v9, %v59_v8  ;;  %p150_p2 = pnand %p148_p1, %p145_p0 }
   0x8   :  { %vm64_vm3 = vmand %vm62_vm1, %vm63_vm2  ;;  %v76_v12 = vld [vmem:[#allocation4] sm:$0x1]  ;;  %v67_v14 = vld [vmem:[#allocation2] sm:$0x1] }
   0x9   :  { %v135_v13 = vsel %vm64_vm3, 1.0, %v156_v1  ;;  %v79_v15 = vadd.f32 %v77_v10, %v76_v12  ;;  %v71_v17 = vld [vmem:[#allocation3] sm:$0x1] }
   0xa   :  { %v69_v16 = vadd.f32 %v135_v13, %v67_v14  ;;  %v74_v18 = vadd.f32 %v72_v11, %v71_v17 }
   0xb   :  { %80 = vst [vmem:[#allocation4] sm:$0x1] %v79_v15 }
   0xc   :  { %70 = vst [vmem:[#allocation2] sm:$0x1] %v69_v16  ;;  %75 = vst [vmem:[#allocation3] sm:$0x1] %v74_v18 }
  0x12   :  { %v108_v19 = vld [vmem:[#allocation4] sm:$0x1] }
  0x13   :  { %v81_v20 = vld [vmem:[#allocation2] sm:$0x1]  ;;  %v109_v21 = vsel %vm82_vm4, %v108_v19, 0.0  ;;  %v95_v23 = vld [vmem:[#allocation3] sm:$0x1] }
  0x14   :  { %v83_v22 = vsel %vm82_vm4, %v81_v20, 0.0  ;;  %110 = vadd.xlane.f32.xlu1 %v109_v21  ;;  %v96_v24 = vsel %vm82_vm4, %v95_v23, 0.0 }
  0x15   :  { %84 = vadd.xlane.f32.xlu0 %v83_v22 }
  0x19   :  { %97 = vadd.xlane.f32.xlu0 %v96_v24 }
  0xa1   :  { %v111_v25 = vpop.xlane.xlu1 %110 }
  0xa2   :  { %v85_v26 = vpop.xlane.xlu0 %84  ;;  %v112_v27 = vrot.slane %v111_v25, 4 }
  0xa3   :  { %v86_v28 = vrot.slane %v85_v26, 4 }
  0xa4   :  { %v113_v29 = vadd.f32 %v112_v27, %v111_v25 }
  0xa5   :  { %v87_v30 = vadd.f32 %v86_v28, %v85_v26 }
  0xa6   :  { %v98_v31 = vpop.xlane.xlu0 %97  ;;  %v114_v32 = vrot.slane %v113_v29, 2 }
  0xa7   :  { %v88_v33 = vrot.slane %v87_v30, 2  ;;  %v99_v34 = vrot.slane %v98_v31, 4 }
  0xa8   :  { %v115_v37 = vadd.f32 %v114_v32, %v113_v29 }
  0xa9   :  { %v100_v35 = vadd.f32 %v99_v34, %v98_v31  ;;  %v89_v36 = vadd.f32 %v88_v33, %v87_v30 }
  0xaa   :  { %v116_v42 = vrot.slane %v115_v37, 1 }
  0xab   :  { %v101_v38 = vrot.slane %v100_v35, 2  ;;  %v90_v39 = vrot.slane %v89_v36, 1 }
  0xac   :  { %v117_v45 = vadd.f32 %v116_v42, %v115_v37 }
  0xad   :  { %v102_v40 = vadd.f32 %v101_v38, %v100_v35  ;;  %v91_v41 = vadd.f32 %v90_v39, %v89_v36 }
  0xaf   :  { %136 = vpush %v91_v41  ;;  %v103_v43 = vrot.slane %v102_v40, 1 }
  0xb1   :  { %v104_v44 = vadd.f32 %v103_v43, %v102_v40 }
  0xb3   :  { %138 = vpush %v104_v44 }
  0xb4   :  { %140 = vpush %v117_v45 }
  0xe0   :  { %s137_s0 = spop %136 }
  0xe1   :  { %94 = sst [smem:[#allocation7]] %s137_s0 }
  0xe4   :  { %s139_s1 = spop %138 }
  0xe5   :  { %107 = sst [smem:[#allocation7 + $0x1]] %s139_s1  ;;  %s141_s2 = spop %140 }
  0xe6   :  { %120 = sst [smem:[#allocation7 + $0x2]] %s141_s2 }
  0xe7   :  { %153 = shalt.err (!%p150_p2)
}
  0xe8   :  { %s157_s29 = smov [#allocation7]  }
  0xe9   :  { %128 = dma.smem_to_hbm %s157_s29, 16, %s211_s4, [#allocation8]  }
  0xea   :  { %154 = dma.done.wait [#allocation8], 16  }
  0xeb   :  { %155 = vsyncadd [#allocation8], 4294967280 }
  0xec   :  { %132 = sfence }
  0xed   :  { %133 = vsyncpa [#allocation8], 1 }

</bundles_post_ra>
